<compile_context>
chip_gen: v6e
topology: v6e:2x2x1
jax: 0.10.0
libtpu: 0.0.40
codegen_flags: <defaults>
</compile_context>

<pallas_src>
import jax
import jax.numpy as jnp
import numpy as np
from jax import lax
from jax.experimental import pallas as pl
from jax.experimental.pallas import tpu as pltpu


# ----------------------------------------------------------------------------
# Plain-JAX glue: sampling / grouping (data-dependent gather / selection)
# ----------------------------------------------------------------------------
def farthest_point_sample(xyz, npoint, key):
    """xyz: [B, N, 3] -> centroid indices [B, npoint]."""
    B, N, _ = xyz.shape
    batch = jnp.arange(B)[:, None]

    def body(i, state):
        distance, farthest, centroids = state
        centroids = centroids.at[:, i].set(farthest)
        centroid = xyz[batch, farthest[:, None], :]               # [B,1,3]
        dist = jnp.sum((xyz - centroid) ** 2, axis=-1)            # [B,N]
        distance = jnp.minimum(distance, dist)
        farthest = jnp.argmax(distance, axis=-1).astype(jnp.int32)
        return distance, farthest, centroids

    init = (jnp.full((B, N), 1e10, jnp.float32),
            jax.random.randint(key, (B,), 0, N, dtype=jnp.int32),
            jnp.zeros((B, npoint), jnp.int32))
    _, _, centroids = lax.fori_loop(0, npoint, body, init)
    return centroids                                              # [B,npoint]


def index_points(points, idx):
    """points: [B, N, C], idx: [B, ...] -> [B, ..., C]."""
    B = points.shape[0]
    batch = jnp.arange(B).reshape((B,) + (1,) * (idx.ndim - 1))
    return points[batch, idx]


def square_distance(src, dst):
    """src: [B, N, C], dst: [B, M, C] -> [B, N, M]."""
    dist = -2.0 * jnp.einsum("bnc,bmc->bnm", src, dst)
    dist += jnp.sum(src ** 2, axis=-1)[:, :, None]
    dist += jnp.sum(dst ** 2, axis=-1)[:, None, :]
    return dist


def query_ball_point(radius, nsample, xyz, new_xyz):
    """xyz: [B, N, 3], new_xyz: [B, S, 3] -> group indices [B, S, nsample].

    Note: if no point is inside the radius, the sentinel index N survives and
    the subsequent gather clamps to N-1 (the PyTorch original would index
    out-of-bounds in that case)."""
    B, N, _ = xyz.shape
    S = new_xyz.shape[1]
    sqrdists = square_distance(new_xyz, xyz)                      # [B,S,N]
    idx = jnp.broadcast_to(jnp.arange(N, dtype=jnp.int32), (B, S, N))
    masked = jnp.where(sqrdists > radius ** 2, N, idx)
    # nsample smallest indices (ascending) via partial selection (top_k of -x)
    neg_top, _ = lax.top_k(-masked, nsample)
    group_idx = -neg_top
    group_first = group_idx[:, :, :1]
    group_idx = jnp.where(group_idx == N, group_first, group_idx)
    return group_idx


# ----------------------------------------------------------------------------
# Fused Pallas kernel: block-diagonal MLP (scale-folded conv1x1 + BN shift)
# + ReLU, running max over K chunks written directly into out_ref.
# ----------------------------------------------------------------------------
def _make_fused_kernel(num_layers, ts, tk, c_in_pad, c_last_pad):
    def kernel(x_ref, *refs):
        out_ref = refs[-1]
        params = refs[:-1]
        kc = pl.program_id(2)

        # (1, TS, TK, C_in_pad) bf16 -> (TS*TK, C_in_pad) rows of point feats.
        h = x_ref[0].reshape(ts * tk, c_in_pad)
        h32 = None
        for j in range(num_layers):
            wt = params[2 * j][...]          # bf16 (c_prev_pad, c_out_pad_j)
            sh = params[2 * j + 1][...]      # f32  (1, c_out_pad_j)
            h32 = jnp.dot(h, wt, preferred_element_type=jnp.float32)
            h32 = jnp.maximum(h32 + sh, 0.0)            # shift + ReLU
            if j + 1 < num_layers:
                h = h32.astype(jnp.bfloat16)

        # Max over this K-chunk; running max straight into the resident
        # output block (ReLU output >= 0, so first-chunk init is exact).
        chunk_max = jnp.max(h32.reshape(ts, tk, c_last_pad), axis=1)

        @pl.when(kc == 0)
        def _():
            out_ref[0] = chunk_max

        @pl.when(kc > 0)
        def _():
            out_ref[0] = jnp.maximum(out_ref[0], chunk_max)

    return kernel


def fused_msg_mlp_max(grouped, layers, *, ts, tk, vmem_limit_bytes):
    """grouped: [B, S, K, C_in_pad] bf16 -> [B, S, C_last_pad] f32."""
    B, S, K, C = grouped.shape
    num_layers = len(layers)
    c_last_pad = layers[-1][0].shape[1]

    in_specs = [pl.BlockSpec((1, ts, tk, C), lambda b, s, k: (b, s, k, 0))]
    args = [grouped]
    for (wt, sh) in layers:
        in_specs.append(pl.BlockSpec(wt.shape, lambda b, s, k: (0, 0)))
        in_specs.append(pl.BlockSpec(sh.shape, lambda b, s, k: (0, 0)))
        args += [wt, sh]

    return pl.pallas_call(
        _make_fused_kernel(num_layers, ts, tk, C, c_last_pad),
        grid=(B, S // ts, K // tk),
        in_specs=in_specs,
        out_specs=pl.BlockSpec((1, ts, c_last_pad), lambda b, s, k: (b, s, 0)),
        out_shape=jax.ShapeDtypeStruct((B, S, c_last_pad), jnp.float32),
        compiler_params=pltpu.CompilerParams(
            dimension_semantics=("parallel", "parallel", "arbitrary"),
            vmem_limit_bytes=vmem_limit_bytes),
    )(*args)


# ----------------------------------------------------------------------------
# Tile-size / VMEM helpers (generation aware)
# ----------------------------------------------------------------------------
def _round_up(x, m):
    return ((x + m - 1) // m) * m


def _vmem_limit_bytes():
    cap = 64 * 1024 * 1024                       # conservative default (v7x)
    try:
        cap = int(pltpu.get_tpu_info().vmem_capacity_bytes)
    except Exception:
        pass
    if cap >= 96 * 1024 * 1024:                  # v5e / v6e: 128 MiB physical
        return int(cap * 0.80)
    return int(cap * 0.70)                       # v7x: 64 MiB -> ~45 MiB


def _choose_tiles(S, K, c_in_pad, out_pads, param_bytes, budget_bytes):
    """Pick (ts, tk). Prefer tk == K (single chunk, contiguous DMA); only
    chunk K when even the smallest S tile does not fit the budget."""
    max_out = max(out_pads)
    c_last = out_pads[-1]

    def cost(ts, tk):
        inp = 2 * ts * tk * c_in_pad * 2         # bf16 input, double-buffered
        out = 2 * ts * c_last * 4                # f32 output, double-buffered
        act = ts * tk * (6 * max_out + 2 * c_in_pad)  # f32+bf16 intermediates
        return inp + out + 2 * param_bytes + act

    ts_cands = sorted({d for d in range(8, S + 1, 8) if S % d == 0} | {S})
    tk_cands = [K] + sorted((d for d in range(16, K, 16) if K % d == 0),
                            reverse=True)
    for tk in tk_cands:
        fits = [t for t in ts_cands if cost(t, tk) <= budget_bytes]
        if fits:
            return max(fits), tk
    return ts_cands[0], tk_cands[-1]             # shrink as far as possible


# ----------------------------------------------------------------------------
# Module
# ----------------------------------------------------------------------------
class PointNetSetAbstractionMsgPallas:
    def __init__(self, npoint, radius_list, nsample_list, in_channel, mlp_list,
                 key):
        assert len(radius_list) == len(nsample_list) == len(mlp_list)
        self.npoint = npoint
        self.radius_list = list(radius_list)
        self.nsample_list = list(nsample_list)
        self.num_scales = len(mlp_list)
        eps = 1e-5

        # --- partition scales into fusion groups (similar K + equal depth) ---
        groups = [[0]]
        for i in range(1, self.num_scales):
            cur = groups[-1]
            ks = [nsample_list[j] for j in cur] + [nsample_list[i]]
            if (len(mlp_list[i]) == len(mlp_list[cur[0]])
                    and max(ks) <= 2 * min(ks)):
                cur.append(i)
            else:
                groups.append([i])
        self.scale_groups = groups

        self.vmem_limit = _vmem_limit_bytes()
        c_in_scale = in_channel + 3

        self.groups_meta = []
        for g in groups:
            num_layers = len(mlp_list[g[0]])
            k_pad = max(nsample_list[i] for i in g)
            c0_total = c_in_scale * len(g)
            c0_pad = _round_up(c0_total, 8)

            c_prev = [c_in_scale] * len(g)
            prev_pad = c0_pad
            layers = []
            param_bytes = 0
            for j in range(num_layers):
                c_out = [mlp_list[i][j] for i in g]
                out_pad = _round_up(sum(c_out), 128)     # lane-dense, all layers
                wt = np.zeros((prev_pad, out_pad), np.float32)
                shift = np.zeros((1, out_pad), np.float32)
                r_off = c_off = 0
                for gi, i in enumerate(g):
                    cin_i, cout_i = c_prev[gi], c_out[gi]
                    key, k1, k2, k3, k4, k5, k6 = jax.random.split(key, 7)
                    w = 0.1 * jax.random.normal(k1, (cout_i, cin_i),
                                                jnp.float32)
                    b = 0.1 * jax.random.normal(k2, (cout_i,), jnp.float32)
                    gamma = 1.0 + 0.1 * jax.random.normal(k3, (cout_i,),
                                                          jnp.float32)
                    beta = 0.1 * jax.random.normal(k4, (cout_i,), jnp.float32)
                    r_mean = 0.1 * jax.random.normal(k5, (cout_i,),
                                                     jnp.float32)
                    r_var = 1.0 + 0.1 * jnp.abs(
                        jax.random.normal(k6, (cout_i,), jnp.float32))
                    s = gamma / jnp.sqrt(r_var + eps)    # BN(eval) fold
                    # Fold the BN scale into the weight columns.
                    wt[r_off:r_off + cin_i, c_off:c_off + cout_i] = np.asarray(
                        (w * s[:, None]).T)
                    shift[0, c_off:c_off + cout_i] = np.asarray(
                        b * s + beta - r_mean * s)
                    r_off += cin_i
                    c_off += cout_i
                wt_b = jnp.asarray(wt, jnp.bfloat16)
                sh = jnp.asarray(shift)
                layers.append((wt_b, sh))
                param_bytes += wt_b.size * 2 + sh.size * 4
                c_prev = c_out
                prev_pad = out_pad

            ts, tk = _choose_tiles(npoint, k_pad, c0_pad,
                                   [l[0].shape[1] for l in layers],
                                   param_bytes, int(self.vmem_limit * 0.7))
            self.groups_meta.append(dict(
                scales=g, k_pad=k_pad, c0_pad=c0_pad, layers=layers,
                c_last_total=sum(c_prev), c_last_pad=prev_pad, ts=ts, tk=tk))

    # ----- grouping for one fusion group (plain JAX gather) -----
    def _group_features(self, xyz_t, points_t, new_xyz, meta):
        B, N, _ = xyz_t.shape
        S = self.npoint
        k_pad = meta["k_pad"]
        feats = []
        for i in meta["scales"]:
            k_i = self.nsample_list[i]
            gidx = query_ball_point(self.radius_list[i], k_i, xyz_t, new_xyz)
            if k_i < k_pad:
                # pad K with a duplicated neighbour: max over K is unchanged
                rep = jnp.broadcast_to(gidx[:, :, :1], (B, S, k_pad - k_i))
                gidx = jnp.concatenate([gidx, rep], axis=-1)
            gxyz = index_points(xyz_t, gidx) - new_xyz[:, :, None, :]
            if points_t is not None:
                gfeat = jnp.concatenate(
                    [index_points(points_t, gidx), gxyz], axis=-1)
            else:
                gfeat = gxyz
            feats.append(gfeat)
        grouped = jnp.concatenate(feats, axis=-1)      # [B,S,k_pad,C_total]
        pad = meta["c0_pad"] - grouped.shape[-1]
        if pad > 0:
            grouped = jnp.pad(grouped, ((0, 0), (0, 0), (0, 0), (0, pad)))
        return grouped.astype(jnp.bfloat16)

    def _prepare(self, xyz, points, key):
        xyz_t = jnp.transpose(xyz, (0, 2, 1))                     # [B,N,3]
        points_t = (None if points is None
                    else jnp.transpose(points, (0, 2, 1)))        # [B,N,D]
        fps_idx = farthest_point_sample(xyz_t, self.npoint, key)
        new_xyz = index_points(xyz_t, fps_idx)                    # [B,S,3]
        return xyz_t, points_t, new_xyz

    def __call__(self, xyz, points, key):
        """xyz: [B,3,N], points: [B,D,N] or None -> ([B,3,S], [B,C',S])."""
        xyz_t, points_t, new_xyz = self._prepare(xyz, points, key)
        outs = []
        for meta in self.groups_meta:
            grouped = self._group_features(xyz_t, points_t, new_xyz, meta)
            out = fused_msg_mlp_max(grouped, meta["layers"],
                                    ts=meta["ts"], tk=meta["tk"],
                                    vmem_limit_bytes=self.vmem_limit)
            outs.append(out[:, :, :meta["c_last_total"]])
        new_points = jnp.transpose(jnp.concatenate(outs, axis=-1), (0, 2, 1))
        return jnp.transpose(new_xyz, (0, 2, 1)), new_points

    # ----- precision-matched pure-JAX reference (tests only) -----
    def reference(self, xyz, points, key):
        xyz_t, points_t, new_xyz = self._prepare(xyz, points, key)
        outs = []
        for meta in self.groups_meta:
            grouped = self._group_features(xyz_t, points_t, new_xyz, meta)
            B, S, K, C = grouped.shape
            h = grouped.reshape(B * S * K, C)
            n_l = len(meta["layers"])
            for j, (wt, sh) in enumerate(meta["layers"]):
                h32 = jnp.maximum(
                    jnp.dot(h, wt, preferred_element_type=jnp.float32) + sh,
                    0.0)
                h = h32.astype(jnp.bfloat16) if j + 1 < n_l else h32
            out = jnp.max(h.reshape(B, S, K, -1), axis=2)
            outs.append(out[:, :, :meta["c_last_total"]])
        new_points = jnp.transpose(jnp.concatenate(outs, axis=-1), (0, 2, 1))
        return jnp.transpose(new_xyz, (0, 2, 1)), new_points


# ----------------------------------------------------------------------------
if __name__ == "__main__":
    key = jax.random.PRNGKey(0)
    k_param, k_xyz, k_pts, k_fps = jax.random.split(key, 4)

    B, N, D = 2, 32, 4            # batch, #points, feature channels
    npoint = 8
    radius_list = [0.4, 0.8]
    nsample_list = [16, 32]
    mlp_list = [[16, 32], [16, 32]]

    module = PointNetSetAbstractionMsgPallas(
        npoint, radius_list, nsample_list, D, mlp_list, k_param)

    xyz = jax.random.uniform(k_xyz, (B, 3, N), jnp.float32)       # [B,3,N]
    points = jax.random.normal(k_pts, (B, D, N), jnp.float32)     # [B,D,N]

    forward = jax.jit(module.__call__)
    new_xyz, new_points = forward(xyz, points, k_fps)
    jax.block_until_ready((new_xyz, new_points))

    assert new_xyz.shape == (B, 3, npoint)
    assert new_points.shape == (B, sum(m[-1] for m in mlp_list), npoint)

    # Correctness self-check vs a precision-matched JAX reference
    # (kept OUT of the production forward path).
    ref_xyz, ref_points = jax.jit(module.reference)(xyz, points, k_fps)
    np.testing.assert_allclose(np.asarray(new_xyz), np.asarray(ref_xyz),
                               rtol=1e-5, atol=1e-5)
    np.testing.assert_allclose(np.asarray(new_points), np.asarray(ref_points),
                               rtol=2e-2, atol=2e-2)

    print("KERNEL_OK")
</pallas_src>

<mosaic_0001>
module attributes {stable_mosaic.version = 11 : i64} {
  func.func @kernel(%arg0: i32, %arg1: i32, %arg2: i32, %arg3: memref<1x8x32x16xbf16, #tpu.memory_space<vmem>>, %arg4: memref<16x128xbf16, #tpu.memory_space<vmem>>, %arg5: memref<1x128xf32, #tpu.memory_space<vmem>>, %arg6: memref<128x128xbf16, #tpu.memory_space<vmem>>, %arg7: memref<1x128xf32, #tpu.memory_space<vmem>>, %arg8: memref<1x8x128xf32, #tpu.memory_space<vmem>>) attributes {dimension_semantics = [#tpu.dimension_semantics<parallel>, #tpu.dimension_semantics<parallel>, #tpu.dimension_semantics<arbitrary>], iteration_bounds = array<i64: 2, 1, 1>, scalar_prefetch = 0 : i64, scratch_operands = 0 : i64, tpu.core_type = #tpu.core_type<tc>, window_params = [{transform_indices = @transform_0, window_bounds = array<i64: 1, 8, 32, 16>}, {pipeline_mode = #tpu.pipeline_mode<synchronous>, transform_indices = @transform_1, window_bounds = array<i64: 16, 128>}, {pipeline_mode = #tpu.pipeline_mode<synchronous>, transform_indices = @transform_2, window_bounds = array<i64: 1, 128>}, {pipeline_mode = #tpu.pipeline_mode<synchronous>, transform_indices = @transform_3, window_bounds = array<i64: 128, 128>}, {pipeline_mode = #tpu.pipeline_mode<synchronous>, transform_indices = @transform_4, window_bounds = array<i64: 1, 128>}, {transform_indices = @transform_5, window_bounds = array<i64: 1, 8, 128>}]} {
    %c0 = arith.constant 0 : index
    %c0_0 = arith.constant 0 : index
    %c0_1 = arith.constant 0 : index
    %c0_2 = arith.constant 0 : index
    %0 = vector.load %arg3[%c0, %c0_0, %c0_1, %c0_2] : memref<1x8x32x16xbf16, #tpu.memory_space<vmem>>, vector<1x8x32x16xbf16>
    %1 = vector.shape_cast %0 : vector<1x8x32x16xbf16> to vector<8x32x16xbf16>
    %2 = vector.shape_cast %1 : vector<8x32x16xbf16> to vector<256x16xbf16>
    %c0_3 = arith.constant 0 : index
    %c0_4 = arith.constant 0 : index
    %3 = vector.load %arg4[%c0_3, %c0_4] : memref<16x128xbf16, #tpu.memory_space<vmem>>, vector<16x128xbf16>
    %c0_5 = arith.constant 0 : index
    %c0_6 = arith.constant 0 : index
    %4 = vector.load %arg5[%c0_5, %c0_6] : memref<1x128xf32, #tpu.memory_space<vmem>>, vector<1x128xf32>
    %cst = arith.constant dense<0.000000e+00> : vector<256x128xf32>
    %5 = tpu.matmul %2, %3, %cst {dimension_numbers = #tpu.dot_dimension_numbers<[1], [0], [0], [1], [0, 0, 1, 1], [], []>} : vector<256x16xbf16>, vector<16x128xbf16>, vector<256x128xf32> -> vector<256x128xf32>
    %6 = vector.broadcast %4 : vector<1x128xf32> to vector<256x128xf32>
    %7 = arith.addf %5, %6 : vector<256x128xf32>
    %cst_7 = arith.constant 0.000000e+00 : f32
    %8 = vector.broadcast %cst_7 : f32 to vector<256x128xf32>
    %9 = arith.maximumf %7, %8 : vector<256x128xf32>
    %10 = arith.truncf %9 : vector<256x128xf32> to vector<256x128xbf16>
    %c0_8 = arith.constant 0 : index
    %c0_9 = arith.constant 0 : index
    %11 = vector.load %arg6[%c0_8, %c0_9] : memref<128x128xbf16, #tpu.memory_space<vmem>>, vector<128x128xbf16>
    %c0_10 = arith.constant 0 : index
    %c0_11 = arith.constant 0 : index
    %12 = vector.load %arg7[%c0_10, %c0_11] : memref<1x128xf32, #tpu.memory_space<vmem>>, vector<1x128xf32>
    %cst_12 = arith.constant dense<0.000000e+00> : vector<256x128xf32>
    %13 = tpu.matmul %10, %11, %cst_12 {dimension_numbers = #tpu.dot_dimension_numbers<[1], [0], [0], [1], [0, 0, 1, 1], [], []>} : vector<256x128xbf16>, vector<128x128xbf16>, vector<256x128xf32> -> vector<256x128xf32>
    %14 = vector.broadcast %12 : vector<1x128xf32> to vector<256x128xf32>
    %15 = arith.addf %13, %14 : vector<256x128xf32>
    %cst_13 = arith.constant 0.000000e+00 : f32
    %16 = vector.broadcast %cst_13 : f32 to vector<256x128xf32>
    %17 = arith.maximumf %15, %16 : vector<256x128xf32>
    %18 = vector.shape_cast %17 : vector<256x128xf32> to vector<8x32x128xf32>
    %cst_14 = arith.constant dense<0xFF800000> : vector<8x128xf32>
    %19 = vector.multi_reduction <maximumf>, %18, %cst_14 [1] : vector<8x32x128xf32> to vector<8x128xf32>
    %c0_i32 = arith.constant 0 : i32
    %20 = arith.cmpi eq, %arg2, %c0_i32 : i32
    %21 = arith.extui %20 : i1 to i32
    %c0_i32_15 = arith.constant 0 : i32
    %22 = arith.cmpi ne, %21, %c0_i32_15 : i32
    scf.if %22 {
      %c0_18 = arith.constant 0 : index
      %c0_19 = arith.constant 0 : index
      %c0_20 = arith.constant 0 : index
      %26 = vector.load %arg8[%c0_18, %c0_19, %c0_20] : memref<1x8x128xf32, #tpu.memory_space<vmem>>, vector<1x8x128xf32>
      %27 = vector.shape_cast %26 : vector<1x8x128xf32> to vector<8x128xf32>
      %28 = vector.shape_cast %19 : vector<8x128xf32> to vector<1x8x128xf32>
      tpu.vector_store %arg8[%c0_18, %c0_19, %c0_20], %28 {strides = array<i32>} : memref<1x8x128xf32, #tpu.memory_space<vmem>>, vector<1x8x128xf32>,
    } else {
    }
    %c0_i32_16 = arith.constant 0 : i32
    %23 = arith.cmpi sgt, %arg2, %c0_i32_16 : i32
    %24 = arith.extui %23 : i1 to i32
    %c0_i32_17 = arith.constant 0 : i32
    %25 = arith.cmpi ne, %24, %c0_i32_17 : i32
    scf.if %25 {
      %c0_18 = arith.constant 0 : index
      %c0_19 = arith.constant 0 : index
      %c0_20 = arith.constant 0 : index
      %26 = vector.load %arg8[%c0_18, %c0_19, %c0_20] : memref<1x8x128xf32, #tpu.memory_space<vmem>>, vector<1x8x128xf32>
      %27 = vector.shape_cast %26 : vector<1x8x128xf32> to vector<8x128xf32>
      %28 = arith.maximumf %27, %19 : vector<8x128xf32>
      %c0_21 = arith.constant 0 : index
      %c0_22 = arith.constant 0 : index
      %c0_23 = arith.constant 0 : index
      %29 = vector.load %arg8[%c0_21, %c0_22, %c0_23] : memref<1x8x128xf32, #tpu.memory_space<vmem>>, vector<1x8x128xf32>
      %30 = vector.shape_cast %29 : vector<1x8x128xf32> to vector<8x128xf32>
      %31 = vector.shape_cast %28 : vector<8x128xf32> to vector<1x8x128xf32>
      tpu.vector_store %arg8[%c0_21, %c0_22, %c0_23], %31 {strides = array<i32>} : memref<1x8x128xf32, #tpu.memory_space<vmem>>, vector<1x8x128xf32>,
    } else {
    }
    return
  }
  func.func @transform_0(%arg0: i32, %arg1: i32, %arg2: i32) -> (i32, i32, i32, i32) {
    %c0_i32 = arith.constant 0 : i32
    %c0_i32_0 = arith.constant 0 : i32
    return %arg0, %arg1, %arg2, %c0_i32 : i32, i32, i32, i32
  }
  func.func @transform_1(%arg0: i32, %arg1: i32, %arg2: i32) -> (i32, i32) {
    %c0_i32 = arith.constant 0 : i32
    %c0_i32_0 = arith.constant 0 : i32
    %c0_i32_1 = arith.constant 0 : i32
    return %c0_i32, %c0_i32_0 : i32, i32
  }
  func.func @transform_2(%arg0: i32, %arg1: i32, %arg2: i32) -> (i32, i32) {
    %c0_i32 = arith.constant 0 : i32
    %c0_i32_0 = arith.constant 0 : i32
    %c0_i32_1 = arith.constant 0 : i32
    return %c0_i32, %c0_i32_0 : i32, i32
  }
  func.func @transform_3(%arg0: i32, %arg1: i32, %arg2: i32) -> (i32, i32) {
    %c0_i32 = arith.constant 0 : i32
    %c0_i32_0 = arith.constant 0 : i32
    %c0_i32_1 = arith.constant 0 : i32
    return %c0_i32, %c0_i32_0 : i32, i32
  }
  func.func @transform_4(%arg0: i32, %arg1: i32, %arg2: i32) -> (i32, i32) {
    %c0_i32 = arith.constant 0 : i32
    %c0_i32_0 = arith.constant 0 : i32
    %c0_i32_1 = arith.constant 0 : i32
    return %c0_i32, %c0_i32_0 : i32, i32
  }
  func.func @transform_5(%arg0: i32, %arg1: i32, %arg2: i32) -> (i32, i32, i32) {
    %c0_i32 = arith.constant 0 : i32
    %c0_i32_0 = arith.constant 0 : i32
    return %arg0, %arg1, %c0_i32 : i32, i32, i32
  }
}

</mosaic_0001>

<bundles_post_ra>
// kernel: custom-call.12
= control target key start
LH: loop header
LB: loop body
LE: loop exit
PB: predicated region body
PF: predicated region fallthrough
CT: control target
= control target key end

     0   :  { %s6_s0 = inlined_call_operand.vmem [shape: f32[2,32], index: 0, kind: output, shape index: {}]  }

// kernel: neg.7
= control target key start
LH: loop header
LB: loop body
LE: loop exit
PB: predicated region body
PF: predicated region fallthrough
CT: control target
= control target key end

     0   :  { %s40_s0 = inlined_call_operand.vmem [shape: s32[2,8,32], index: 0, kind: input, shape index: {}]   ;;  %s41_s1 = inlined_call_operand.vmem [shape: s32[2,8,32], index: 1, kind: output, shape index: {}]  }
   0x1   :  { %v2_v0 = vld [vmem:[%s40_s0] sm:$0xff]  ;;  %v16_v1 = vld [vmem:[%s40_s0 + $0x8] sm:$0xff] }
   0x2   :  { %v5_v2 = vsub.s32 0, %v2_v0  ;;  %v12_v3 = vsub.s32 0, %v16_v1 }
   0x4   :  { %7 = vst [vmem:[%s41_s1] sm:$0xff] %v5_v2  ;;  %17 = vst [vmem:[%s41_s1 + $0x8] sm:$0xff] %v12_v3 }

// kernel: a_call__.1
= control target key start
LH: loop header
LB: loop body
LE: loop exit
PB: predicated region body
PF: predicated region fallthrough
CT: control target
= control target key end

     0   :  { %s1447_s18 = smov 0   ;;  %s1449_s19 = smov 0   ;;  %s1619_s0 = inlined_call_operand.vmem [shape: bf16[2,8,32,16], index: 0, kind: input, shape index: {}]   ;;  %s1620_s1 = inlined_call_operand.vmem [shape: bf16[16,128], index: 1, kind: input, shape index: {}]   ;;  %s1621_s2 = inlined_call_operand.vmem [shape: f32[1,128], index: 2, kind: input, shape index: {}]   ;;  %s1622_s3 = inlined_call_operand.vmem [shape: bf16[128,128], index: 3, kind: input, shape index: {}]   ;;  %s1623_s4 = inlined_call_operand.vmem [shape: f32[1,128], index: 4, kind: input, shape index: {}]   ;;  %s1624_s5 = inlined_call_operand.vmem [shape: f32[2,8,128], index: 5, kind: output, shape index: {}]  }
   0x1   :  { %s1451_s20 = smov 0  }
   0x2 LB: > { %s34_s21 = sadd.s32 1, %s1411_s19  ;;  %p1155_p0 = scmp.ge.s32.totalorder %s1415_s20, 1  ;;  %s1415_s20 = sphi %s1451_s20, %s15_s20   ;;  %s1411_s19 = sphi %s1449_s19, %s1626_s19   ;;  %s1407_s18 = sphi %s1447_s18, %s1625_s18  }
   0x3   : > { %p36_p1 = scmp.ge.s32.totalorder %s34_s21, 2  ;;  %p223_p2 = scmp.lt.s32.totalorder %s1415_s20, 3 }
   0x5   : > { %s1628_s21 = smov (%p36_p1, %s34_s21), 0  ;;  %p224_p3 = pnand %p1155_p0, %p223_p2 }
   0x6   : > { %p264_p4 = scmp.lt.s32.totalorder (!%p224_p3), %s1407_s18, 1 }
   0x7   : > { %227 = sbr.rel (%p224_p3) target bundleno = 502 (0x1f6), region = 40 }
   0xc   : > { %v1368_v0 = vld [vmem:[%s1620_s1] sm:$0xff]   ;;  %v1385_v1 = vld [vmem:[%s1622_s3 + $0x38] sm:$0xff]   ;;  %s1630_s18 = smov (!%p264_p4, %s1407_s18), 1  ;;  %v1386_v2 = vld [vmem:[%s1622_s3 + $0x30] sm:$0xff]   ;;  %vm413_vm0 = vcmask 130048   ;;  %vm1019_vm1 = vcmask 1041409  }
   0xd   : > { %1246 = vmatprep.subr.bf16.mxu0 %v1368_v0  ;;  %1328 = vmatprep.subr.bf16.mxu1 %v1385_v1  ;;  %s1204_s28 = sshll.u32 %s1630_s18, 7  ;;  %v1387_v3 = vld [vmem:[%s1622_s3 + $0x28] sm:$0xff]   ;;  %v1388_v7 = vld [vmem:[%s1622_s3 + $0x20] sm:$0xff]   ;;  %v1389_v10 = vld [vmem:[%s1622_s3 + $0x18] sm:$0xff]   ;;  %vm1021_vm2 = vcmask 1042434   ;;  %vm1023_vm3 = vcmask 1043459  }
   0xe   : > { %1247 = vmatpush3.bf16.msra.mxu0 %v1368_v0  ;;  %1336 = vmatpush3.bf16.msra.mxu1 %v1385_v1  ;;  %s1480_s6 = scalar_lea.vmem %s1619_s0, %s1204_s28  ;;  %v1390_v22 = vld [vmem:[%s1622_s3 + $0x10] sm:$0xff]   ;;  %v1391_v23 = vld [vmem:[%s1622_s3 + $0x8] sm:$0xff]   ;;  %v1392_v24 = vld [vmem:[%s1622_s3] sm:$0xff]   ;;  %vm1025_vm4 = vcmask 1044484   ;;  %vm1027_vm5 = vcmask 1045509   ;;  %s1158_s27 = sshll.u32 %s1630_s18, 3 }
   0xf   : > { %1280 = vmatprep.subr.bf16.mxu0 %v1385_v1  ;;  %1329 = vmatprep.subr.bf16.mxu1 %v1386_v2  ;;  %v1369_v4 = vld [vmem:[%s1480_s6] sm:$0xff]   ;;  %v1370_v5 = vld [vmem:[%s1480_s6 + $0x8] sm:$0xff]   ;;  %v1371_v6 = vld [vmem:[%s1480_s6 + $0x10] sm:$0xff]   ;;  %vm1029_vm6 = vcmask 1046534   ;;  %vm1031_vm7 = vcmask 1047559   ;;  %s284_s30 = scalar_lea.vmem %s1624_s5, %s1158_s27 }
  0x10   : > { %1248 = vmatprep.mubr.msk.bf16.mxu0 %vm413_vm0, %v1369_v4  ;;  %v1372_v8 = vld [vmem:[%s1480_s6 + $0x18] sm:$0xff]   ;;  %v1373_v9 = vld [vmem:[%s1480_s6 + $0x20] sm:$0xff]   ;;  %v1374_v11 = vld [vmem:[%s1480_s6 + $0x28] sm:$0xff]  }
  0x11   : > { %1249 = vmatmul.mubr.msk.bf16.vlgmr.msra.gmra.mxu0 %vm413_vm0, %v1370_v5  ;;  %v1375_v12 = vld [vmem:[%s1480_s6 + $0x30] sm:$0xff]   ;;  %v1376_v13 = vld [vmem:[%s1480_s6 + $0x38] sm:$0xff]   ;;  %v1377_v14 = vld [vmem:[%s1480_s6 + $0x40] sm:$0xff]  }
  0x12   : > { %1337 = vmatpush3.bf16.msra.mxu1 %v1386_v2  ;;  %1252 = vmatprep.mubr.msk.bf16.mxu0 %vm413_vm0, %v1371_v6  ;;  %v1378_v15 = vld [vmem:[%s1480_s6 + $0x48] sm:$0xff]   ;;  %v1379_v16 = vld [vmem:[%s1480_s6 + $0x50] sm:$0xff]   ;;  %v1380_v17 = vld [vmem:[%s1480_s6 + $0x58] sm:$0xff]  }
  0x13   : > { %1330 = vmatprep.subr.bf16.mxu1 %v1387_v3  ;;  %1281 = vmatpush3.bf16.msra.mxu0 %v1385_v1  ;;  %v1381_v18 = vld [vmem:[%s1480_s6 + $0x60] sm:$0xff]   ;;  %v1382_v19 = vld [vmem:[%s1480_s6 + $0x68] sm:$0xff]   ;;  %v1383_v20 = vld [vmem:[%s1480_s6 + $0x70] sm:$0xff]  }
  0x14   : > { %1282 = vmatprep.subr.bf16.mxu0 %v1386_v2  ;;  %v1384_v21 = vld [vmem:[%s1480_s6 + $0x78] sm:$0xff]   ;;  %v1535_v27 = vld [vmem:[%s1621_s2] ss:$0 sm:$0xff] }
  0x16   : > { %1338 = vmatpush3.bf16.msra.mxu1 %v1387_v3 }
  0x17   : > { %1331 = vmatprep.subr.bf16.mxu1 %v1388_v7  ;;  %1283 = vmatpush3.bf16.msra.mxu0 %v1386_v2 }
  0x18   : > { %1284 = vmatprep.subr.bf16.mxu0 %v1387_v3 }
  0x19   : > { %1253 = vmatmul.mubr.msk.bf16.gmra.mxu0 %vm413_vm0, %v1372_v8 }
  0x1a   : > { %1339 = vmatpush3.bf16.msra.mxu1 %v1388_v7  ;;  %1256 = vmatprep.mubr.msk.bf16.mxu0 %vm413_vm0, %v1373_v9 }
  0x1b   : > { %1332 = vmatprep.subr.bf16.mxu1 %v1389_v10  ;;  %1285 = vmatpush3.bf16.msra.mxu0 %v1387_v3 }
  0x1c   : > { %1286 = vmatprep.subr.bf16.mxu0 %v1388_v7 }
  0x1e   : > { %1340 = vmatpush3.bf16.msra.mxu1 %v1389_v10 }
  0x1f   : > { %1287 = vmatpush3.bf16.msra.mxu0 %v1388_v7  ;;  %1333 = vmatprep.subr.bf16.mxu1 %v1390_v22 }
  0x20   : > { %1288 = vmatprep.subr.bf16.mxu0 %v1389_v10 }
  0x21   : > { %1257 = vmatmul.mubr.msk.bf16.gmra.mxu0 %vm413_vm0, %v1374_v11 }
  0x22   : > { %1260 = vmatprep.mubr.msk.bf16.mxu0 %vm413_vm0, %v1375_v12  ;;  %1341 = vmatpush3.bf16.msra.mxu1 %v1390_v22 }
  0x23   : > { %1289 = vmatpush3.bf16.msra.mxu0 %v1389_v10  ;;  %1334 = vmatprep.subr.bf16.mxu1 %v1391_v23 }
  0x24   : > { %1290 = vmatprep.subr.bf16.mxu0 %v1390_v22 }
  0x26   : > { %1342 = vmatpush3.bf16.msra.mxu1 %v1391_v23 }
  0x27   : > { %1291 = vmatpush3.bf16.msra.mxu0 %v1390_v22  ;;  %1335 = vmatprep.subr.bf16.mxu1 %v1392_v24 }
  0x28   : > { %1292 = vmatprep.subr.bf16.mxu0 %v1391_v23 }
  0x29   : > { %1261 = vmatmul.mubr.msk.bf16.gmra.mxu0 %vm413_vm0, %v1376_v13 }
  0x2a   : > { %1264 = vmatprep.mubr.msk.bf16.mxu0 %vm413_vm0, %v1377_v14  ;;  %1343 = vmatpush3.bf16.msra.mxu1 %v1392_v24 }
  0x2b   : > { %1293 = vmatpush3.bf16.msra.mxu0 %v1391_v23 }
  0x2c   : > { %1294 = vmatprep.subr.bf16.mxu0 %v1392_v24 }
  0x2f   : > { %1295 = vmatpush3.bf16.msra.mxu0 %v1392_v24 }
  0x31   : > { %1265 = vmatmul.mubr.msk.bf16.gmra.mxu0 %vm413_vm0, %v1378_v15 }
  0x32   : > { %1268 = vmatprep.mubr.msk.bf16.mxu0 %vm413_vm0, %v1379_v16 }
  0x39   : > { %1269 = vmatmul.mubr.msk.bf16.gmra.mxu0 %vm413_vm0, %v1380_v17 }
  0x3a   : > { %1272 = vmatprep.mubr.msk.bf16.mxu0 %vm413_vm0, %v1381_v18 }
  0x41   : > { %1273 = vmatmul.mubr.msk.bf16.gmra.mxu0 %vm413_vm0, %v1382_v19 }
  0x42   : > { %1276 = vmatprep.mubr.msk.bf16.mxu0 %vm413_vm0, %v1383_v20 }
  0x49   : > { %1277 = vmatmul.mubr.msk.bf16.gmra.mxu0 %vm413_vm0, %v1384_v21 }
  0xd1   : > { %v1250_v25 = vpop.f32.mrf.mxu0 }
  0xd2   : > { %v505_v31 = vadd.f32 %v1250_v25, %v1535_v27 }
  0xd3   : > { %v496_v26 = vpop.f32.mrf.mxu0 }
  0xd4   : > { %v497_v29 = vadd.f32 %v1535_v27, %v496_v26  ;;  %v625_v38 = vmax.f32 %v505_v31, 0.0 }
  0xd5   : > { %v1251_v28 = vpop.f32.mrf.mxu0 }
  0xd6   : > { %v508_v30 = vadd.f32 %v1251_v28, %v1535_v27  ;;  %v623_v36 = vmax.f32 %v497_v29, 0.0 }
  0xd7   : > { %v499_v32 = vpop.f32.mrf.mxu0 }
  0xd8   : > { %v500_v33 = vadd.f32 %v1535_v27, %v499_v32  ;;  %v626_v34 = vmax.f32 %v508_v30, 0.0 }
  0xd9   : > { %v1254_v35 = vpop.f32.mrf.mxu0 }
  0xda   : > { %v624_v37 = vmax.f32 %v500_v33, 0.0  ;;  %v656_v41 = vpack.c.bf16 %v626_v34, %v625_v38  ;;  %v521_v45 = vadd.f32 %v1254_v35, %v1535_v27 }
  0xdb   : > { %v512_v39 = vpop.f32.mrf.mxu0 }
  0xdc   : > { %v655_v40 = vpack.c.bf16 %v624_v37, %v623_v36  ;;  %v513_v43 = vadd.f32 %v1535_v27, %v512_v39  ;;  %v629_v52 = vmax.f32 %v521_v45, 0.0 }
  0xdd   : > { %v1255_v42 = vpop.f32.mrf.mxu0 }
  0xde   : > { %v524_v44 = vadd.f32 %v1255_v42, %v1535_v27  ;;  %1296 = vmatprep.mubr.bf16.mxu0 %v655_v40  ;;  %v627_v50 = vmax.f32 %v513_v43, 0.0 }
  0xdf   : > { %v515_v46 = vpop.f32.mrf.mxu0  ;;  %1297 = vmatmul.mubr.bf16.vlgmr.msra.gmra.mxu0 %v656_v41 }
  0xe0   : > { %v516_v47 = vadd.f32 %v1535_v27, %v515_v46  ;;  %v630_v48 = vmax.f32 %v524_v44, 0.0 }
  0xe1   : > { %v1258_v49 = vpop.f32.mrf.mxu0 }
  0xe2   : > { %v628_v51 = vmax.f32 %v516_v47, 0.0  ;;  %v658_v55 = vpack.c.bf16 %v630_v48, %v629_v52  ;;  %v537_v59 = vadd.f32 %v1258_v49, %v1535_v27 }
  0xe3   : > { %v528_v53 = vpop.f32.mrf.mxu0 }
  0xe4   : > { %v657_v54 = vpack.c.bf16 %v628_v51, %v627_v50  ;;  %v529_v57 = vadd.f32 %v1535_v27, %v528_v53  ;;  %v633_v2 = vmax.f32 %v537_v59, 0.0 }
  0xe5   : > { %v1259_v56 = vpop.f32.mrf.mxu0 }
  0xe6   : > { %v540_v58 = vadd.f32 %v1259_v56, %v1535_v27  ;;  %1300 = vmatprep.mubr.bf16.mxu1 %v657_v54  ;;  %v631_v0 = vmax.f32 %v529_v57, 0.0 }
  0xe7   : > { %v531_v60 = vpop.f32.mrf.mxu0  ;;  %1301 = vmatmul.mubr.bf16.vlgmr.msra.gmra.mxu1 %v658_v55 }
  0xe8   : > { %v532_v61 = vadd.f32 %v1535_v27, %v531_v60  ;;  %v634_v62 = vmax.f32 %v540_v58, 0.0 }
  0xe9   : > { %v1262_v63 = vpop.f32.mrf.mxu0 }
  0xea   : > { %v632_v1 = vmax.f32 %v532_v61, 0.0  ;;  %v660_v5 = vpack.c.bf16 %v634_v62, %v633_v2  ;;  %v553_v9 = vadd.f32 %v1262_v63, %v1535_v27 }
  0xeb   : > { %v544_v3 = vpop.f32.mrf.mxu0 }
  0xec   : > { %v659_v4 = vpack.c.bf16 %v632_v1, %v631_v0  ;;  %v545_v7 = vadd.f32 %v1535_v27, %v544_v3  ;;  %v637_v16 = vmax.f32 %v553_v9, 0.0 }
  0xed   : > { %v1263_v6 = vpop.f32.mrf.mxu0 }
  0xee   : > { %v556_v8 = vadd.f32 %v1263_v6, %v1535_v27  ;;  %1304 = vmatprep.mubr.bf16.mxu1 %v659_v4  ;;  %v635_v14 = vmax.f32 %v545_v7, 0.0 }
  0xef   : > { %v547_v10 = vpop.f32.mrf.mxu0  ;;  %1305 = vmatmul.mubr.bf16.gmra.mxu1 %v660_v5 }
  0xf0   : > { %v548_v11 = vadd.f32 %v1535_v27, %v547_v10  ;;  %v638_v12 = vmax.f32 %v556_v8, 0.0 }
  0xf1   : > { %v1266_v13 = vpop.f32.mrf.mxu0 }
  0xf2   : > { %v636_v15 = vmax.f32 %v548_v11, 0.0  ;;  %v662_v19 = vpack.c.bf16 %v638_v12, %v637_v16  ;;  %v569_v23 = vadd.f32 %v1266_v13, %v1535_v27 }
  0xf3   : > { %v560_v17 = vpop.f32.mrf.mxu0 }
  0xf4   : > { %v661_v18 = vpack.c.bf16 %v636_v15, %v635_v14  ;;  %v561_v21 = vadd.f32 %v1535_v27, %v560_v17  ;;  %v641_v31 = vmax.f32 %v569_v23, 0.0 }
  0xf5   : > { %v1267_v20 = vpop.f32.mrf.mxu0 }
  0xf6   : > { %v572_v22 = vadd.f32 %v1267_v20, %v1535_v27  ;;  %1308 = vmatprep.mubr.bf16.mxu1 %v661_v18  ;;  %v639_v29 = vmax.f32 %v561_v21, 0.0 }
  0xf7   : > { %v563_v24 = vpop.f32.mrf.mxu0  ;;  %1309 = vmatmul.mubr.bf16.gmra.mxu1 %v662_v19 }
  0xf8   : > { %v564_v25 = vadd.f32 %v1535_v27, %v563_v24  ;;  %v642_v26 = vmax.f32 %v572_v22, 0.0 }
  0xf9   : > { %v1270_v28 = vpop.f32.mrf.mxu0 }
  0xfa   : > { %v640_v30 = vmax.f32 %v564_v25, 0.0  ;;  %v664_v34 = vpack.c.bf16 %v642_v26, %v641_v31  ;;  %v585_v38 = vadd.f32 %v1270_v28, %v1535_v27  ;;  %v1572_v25 = vld [vmem:[%s1623_s4] ss:$0 sm:$0xff] }
  0xfb   : > { %v576_v32 = vpop.f32.mrf.mxu0 }
  0xfc   : > { %v663_v33 = vpack.c.bf16 %v640_v30, %v639_v29  ;;  %v577_v36 = vadd.f32 %v1535_v27, %v576_v32  ;;  %v645_v45 = vmax.f32 %v585_v38, 0.0 }
  0xfd   : > { %v1271_v35 = vpop.f32.mrf.mxu0 }
  0xfe   : > { %v588_v37 = vadd.f32 %v1271_v35, %v1535_v27  ;;  %1312 = vmatprep.mubr.bf16.mxu1 %v663_v33  ;;  %v643_v43 = vmax.f32 %v577_v36, 0.0 }
  0xff   : > { %v579_v39 = vpop.f32.mrf.mxu0  ;;  %1313 = vmatmul.mubr.bf16.gmra.mxu1 %v664_v34 }
 0x100   : > { %v580_v40 = vadd.f32 %v1535_v27, %v579_v39  ;;  %v646_v41 = vmax.f32 %v588_v37, 0.0 }
 0x101   : > { %v1274_v42 = vpop.f32.mrf.mxu0 }
 0x102   : > { %v644_v44 = vmax.f32 %v580_v40, 0.0  ;;  %v666_v48 = vpack.c.bf16 %v646_v41, %v645_v45  ;;  %v601_v52 = vadd.f32 %v1274_v42, %v1535_v27 }
 0x103   : > { %v592_v46 = vpop.f32.mrf.mxu0 }
 0x104   : > { %v665_v47 = vpack.c.bf16 %v644_v44, %v643_v43  ;;  %v593_v50 = vadd.f32 %v1535_v27, %v592_v46  ;;  %v649_v59 = vmax.f32 %v601_v52, 0.0 }
 0x105   : > { %v1275_v49 = vpop.f32.mrf.mxu0 }
 0x106   : > { %v604_v51 = vadd.f32 %v1275_v49, %v1535_v27  ;;  %1316 = vmatprep.mubr.bf16.mxu1 %v665_v47  ;;  %v647_v57 = vmax.f32 %v593_v50, 0.0 }
 0x107   : > { %v595_v53 = vpop.f32.mrf.mxu0  ;;  %1317 = vmatmul.mubr.bf16.gmra.mxu1 %v666_v48 }
 0x108   : > { %v596_v54 = vadd.f32 %v1535_v27, %v595_v53  ;;  %v650_v55 = vmax.f32 %v604_v51, 0.0 }
 0x109   : > { %v1278_v56 = vpop.f32.mrf.mxu0 }
 0x10a   : > { %v648_v58 = vmax.f32 %v596_v54, 0.0  ;;  %v668_v62 = vpack.c.bf16 %v650_v55, %v649_v59  ;;  %v617_v2 = vadd.f32 %v1278_v56, %v1535_v27 }
 0x10b   : > { %v608_v60 = vpop.f32.mrf.mxu0 }
 0x10c   : > { %v667_v61 = vpack.c.bf16 %v648_v58, %v647_v57  ;;  %v609_v0 = vadd.f32 %v1535_v27, %v608_v60  ;;  %v653_v8 = vmax.f32 %v617_v2, 0.0 }
 0x10d   : > { %v1279_v63 = vpop.f32.mrf.mxu0 }
 0x10e   : > { %v620_v1 = vadd.f32 %v1279_v63, %v1535_v27  ;;  %1320 = vmatprep.mubr.bf16.mxu1 %v667_v61  ;;  %v651_v6 = vmax.f32 %v609_v0, 0.0 }
 0x10f   : > { %v611_v3 = vpop.f32.mrf.mxu0  ;;  %1321 = vmatmul.mubr.bf16.gmra.mxu1 %v668_v62 }
 0x110   : > { %v612_v4 = vadd.f32 %v1535_v27, %v611_v3  ;;  %v654_v5 = vmax.f32 %v620_v1, 0.0 }
 0x112   : > { %v652_v7 = vmax.f32 %v612_v4, 0.0  ;;  %v670_v10 = vpack.c.bf16 %v654_v5, %v653_v8 }
 0x114   : > { %v669_v9 = vpack.c.bf16 %v652_v7, %v651_v6 }
 0x116   : > { %1324 = vmatprep.mubr.bf16.mxu1 %v669_v9 }
 0x117   : > { %1325 = vmatmul.mubr.bf16.gmra.mxu1 %v670_v10 }
 0x19f   : > { %v1298_v17 = vpop.f32.mrf.mxu0 }
 0x1a0   : > { %v785_v38 = vadd.f32 %v1298_v17, %v1572_v25 }
 0x1a1   : > { %v776_v20 = vpop.f32.mrf.mxu0 }
 0x1a2   : > { %v777_v36 = vadd.f32 %v1572_v25, %v776_v20  ;;  %v905_v58 = vmax.f32 %v785_v38, 0.0 }
 0x1a3   : > { %v1299_v22 = vpop.f32.mrf.mxu0 }
 0x1a4   : > { %v903_v50 = vmax.f32 %v777_v36, 0.0  ;;  %v788_v3 = vadd.f32 %v1299_v22, %v1572_v25 }
 0x1a5   : > { %v779_v26 = vpop.f32.mrf.mxu0 }
 0x1a6   : > { %v780_v31 = vadd.f32 %v1572_v25, %v779_v26 }
 0x1a7   : > { %v1302_v11 = vpop.f32.mrf.mxu1 }
 0x1a8   : > { %v904_v42 = vmax.f32 %v780_v31, 0.0  ;;  %v801_v43 = vadd.f32 %v1302_v11, %v1572_v25 }
 0x1a9   : > { %v792_v12 = vpop.f32.mrf.mxu1 }
 0x1aa   : > { %v793_v32 = vadd.f32 %v1572_v25, %v792_v12  ;;  %v935_v59 = vmax.f32 %v903_v50, %v904_v42  ;;  %v909_v60 = vmax.f32 %v801_v43, 0.0 }
 0x1ab   : > { %v1303_v13 = vpop.f32.mrf.mxu1 }
 0x1ac   : > { %v907_v44 = vmax.f32 %v793_v32, 0.0  ;;  %v804_v61 = vadd.f32 %v1303_v13, %v1572_v25  ;;  %v936_v12 = vmax.f32 %v935_v59, %v905_v58 }
 0x1ad   : > { %v795_v14 = vpop.f32.mrf.mxu1 }
 0x1ae   : > { %v796_v29 = vadd.f32 %v1572_v25, %v795_v14  ;;  %v910_v13 = vmax.f32 %v804_v61, 0.0 }
 0x1af   : > { %v1306_v15 = vpop.f32.mrf.mxu1 }
 0x1b0   : > { %v908_v37 = vmax.f32 %v796_v29, 0.0  ;;  %v817_v52 = vadd.f32 %v1306_v15, %v1572_v25 }
 0x1b1   : > { %v808_v16 = vpop.f32.mrf.mxu1 }
 0x1b2   : > { %v809_v39 = vadd.f32 %v1572_v25, %v808_v16  ;;  %v944_v51 = vmax.f32 %v907_v44, %v908_v37  ;;  %v913_v5 = vmax.f32 %v817_v52, 0.0 }
 0x1b3   : > { %v1307_v18 = vpop.f32.mrf.mxu1 }
 0x1b4   : > { %v911_v53 = vmax.f32 %v809_v39, 0.0  ;;  %v945_v4 = vmax.f32 %v944_v51, %v909_v60  ;;  %v820_v7 = vadd.f32 %v1307_v18, %v1572_v25 }
 0x1b5   : > { %v811_v19 = vpop.f32.mrf.mxu1 }
 0x1b6   : > { %v812_v33 = vadd.f32 %v1572_v25, %v811_v19  ;;  %v914_v26 = vmax.f32 %v820_v7, 0.0 }
 0x1b7   : > { %v1310_v21 = vpop.f32.mrf.mxu1 }
 0x1b8   : > { %v912_v46 = vmax.f32 %v812_v33, 0.0  ;;  %v833_v54 = vadd.f32 %v1310_v21, %v1572_v25 }
 0x1b9   : > { %v824_v27 = vpop.f32.mrf.mxu1 }
 0x1ba   : > { %v825_v40 = vadd.f32 %v1572_v25, %v824_v27  ;;  %v953_v62 = vmax.f32 %v911_v53, %v912_v46  ;;  %v917_v8 = vmax.f32 %v833_v54, 0.0  ;;  %v906_v27 = vmax.f32 %v788_v3, 0.0 }
 0x1bb   : > { %v1311_v23 = vpop.f32.mrf.mxu1 }
 0x1bc   : > { %v915_v55 = vmax.f32 %v825_v40, 0.0  ;;  %v836_v9 = vadd.f32 %v1311_v23, %v1572_v25  ;;  %v954_v16 = vmax.f32 %v953_v62, %v913_v5  ;;  %v946_v23 = vmax.f32 %v945_v4, %v910_v13 }
 0x1bd   : > { %v827_v24 = vpop.f32.mrf.mxu1  ;;  %v937_v33 = vmax.f32 %v936_v12, %v906_v27 }
 0x1be   : > { %v828_v34 = vadd.f32 %v1572_v25, %v827_v24 }
 0x1bf   : > { %v1314_v28 = vpop.f32.mrf.mxu1 }
 0x1c0   : > { %v916_v47 = vmax.f32 %v828_v34, 0.0  ;;  %v849_v0 = vadd.f32 %v1314_v28, %v1572_v25  ;;  %v918_v28 = vmax.f32 %v836_v9, 0.0  ;;  %v955_v34 = vmax.f32 %v954_v16, %v914_v26 }
 0x1c1   : > { %v840_v30 = vpop.f32.mrf.mxu1 }
 0x1c2   : > { %v841_v48 = vadd.f32 %v1572_v25, %v840_v30  ;;  %v962_v63 = vmax.f32 %v915_v55, %v916_v47  ;;  %v921_v19 = vmax.f32 %v849_v0, 0.0  ;;  %v938_v47 = vrot.slane %v937_v33, 4 }
 0x1c3   : > { %v1315_v35 = vpop.f32.mrf.mxu1 }
 0x1c4   : > { %v919_v1 = vmax.f32 %v841_v48, 0.0  ;;  %v963_v17 = vmax.f32 %v962_v63, %v917_v8  ;;  %v852_v20 = vadd.f32 %v1315_v35, %v1572_v25  ;;  %v956_v48 = vrot.slane %v955_v34, 4 }
 0x1c5   : > { %v843_v41 = vpop.f32.mrf.mxu1  ;;  %v939_v60 = vmax.f32 %v937_v33, %v938_v47 }
 0x1c6   : > { %v844_v45 = vadd.f32 %v1572_v25, %v843_v41  ;;  %v964_v36 = vmax.f32 %v963_v17, %v918_v28  ;;  %v922_v37 = vmax.f32 %v852_v20, 0.0  ;;  %v947_v41 = vrot.slane %v946_v23, 4 }
 0x1c7   : > { %v1318_v49 = vpop.f32.mrf.mxu1  ;;  %v957_v61 = vmax.f32 %v955_v34, %v956_v48 }
 0x1c8   : > { %v920_v56 = vmax.f32 %v844_v45, 0.0  ;;  %v865_v14 = vadd.f32 %v1318_v49, %v1572_v25  ;;  %v965_v49 = vrot.slane %v964_v36, 4  ;;  %v948_v54 = vmax.f32 %v946_v23, %v947_v41 }
 0x1c9   : > { %v856_v57 = vpop.f32.mrf.mxu1 }
 0x1ca   : > { %v857_v6 = vadd.f32 %v1572_v25, %v856_v57  ;;  %v971_v10 = vmax.f32 %v919_v1, %v920_v56  ;;  %v925_v31 = vmax.f32 %v865_v14, 0.0  ;;  %v966_v62 = vmax.f32 %v964_v36, %v965_v49 }
 0x1cb   : > { %v1319_v2 = vpop.f32.mrf.mxu1  ;;  %v949_v3 = vrot.slane %v948_v54, 2 }
 0x1cc   : > { %v923_v22 = vmax.f32 %v857_v6, 0.0  ;;  %v868_v18 = vadd.f32 %v1319_v2, %v1572_v25  ;;  %v972_v29 = vmax.f32 %v971_v10, %v921_v19  ;;  %v940_v10 = vrot.slane %v939_v60, 2 }
 0x1cd   : > { %v859_v11 = vpop.f32.mrf.mxu1  ;;  %v967_v12 = vrot.slane %v966_v62, 2  ;;  %v950_v17 = vmax.f32 %v948_v54, %v949_v3 }
 0x1ce   : > { %v860_v15 = vadd.f32 %v1572_v25, %v859_v11  ;;  %v926_v39 = vmax.f32 %v868_v18, 0.0  ;;  %v973_v42 = vmax.f32 %v972_v29, %v922_v37  ;;  %v958_v11 = vrot.slane %v957_v61, 2 }
 0x1cf   : > { %v1322_v21 = vpop.f32.mrf.mxu1  ;;  %v941_v18 = vmax.f32 %v939_v60, %v940_v10  ;;  %v968_v23 = vmax.f32 %v966_v62, %v967_v12 }
 0x1d0   : > { %v924_v24 = vmax.f32 %v860_v15, 0.0  ;;  %v881_v45 = vadd.f32 %v1322_v21, %v1572_v25  ;;  %v974_v55 = vrot.slane %v973_v42, 4 }
 0x1d1   : > { %v872_v30 = vpop.f32.mrf.mxu1  ;;  %v969_v37 = vrot.slane %v968_v23, 1 }
 0x1d2   : > { %v980_v32 = vmax.f32 %v923_v22, %v924_v24  ;;  %v873_v40 = vadd.f32 %v1572_v25, %v872_v30  ;;  %v929_v58 = vmax.f32 %v881_v45, 0.0  ;;  %v975_v4 = vmax.f32 %v973_v42, %v974_v55 }
 0x1d3   : > { %v1323_v38 = vpop.f32.mrf.mxu1  ;;  %v959_v24 = vmax.f32 %v957_v61, %v958_v11  ;;  %v970_v45 = vmax.f32 %v968_v23, %v969_v37 }
 0x1d4   : > { %v981_v35 = vmax.f32 %v980_v32, %v925_v31  ;;  %v927_v51 = vmax.f32 %v873_v40, 0.0  ;;  %v884_v52 = vadd.f32 %v1323_v38, %v1572_v25  ;;  %v976_v19 = vrot.slane %v975_v4, 2 }
 0x1d5   : > { %v875_v43 = vpop.f32.mrf.mxu1  ;;  %v951_v31 = vrot.slane %v950_v17, 1  ;;  %v960_v34 = vrot.slane %v959_v24, 1 }
 0x1d6   : > { %v982_v44 = vmax.f32 %v981_v35, %v926_v39  ;;  %v876_v46 = vadd.f32 %v1572_v25, %v875_v43  ;;  %v930_v0 = vmax.f32 %v884_v52, 0.0  ;;  %v977_v30 = vmax.f32 %v975_v4, %v976_v19 }
 0x1d7   : > { %v1326_v50 = vpop.f32.mrf.mxu1  ;;  %v952_v35 = vmax.f32 %v950_v17, %v951_v31  ;;  %v961_v42 = vmax.f32 %v959_v24, %v960_v34 }
 0x1d8   : > { %v928_v53 = vmax.f32 %v876_v46, 0.0  ;;  %v983_v57 = vrot.slane %v982_v44, 4  ;;  %v897_v8 = vadd.f32 %v1326_v50, %v1572_v25  ;;  %v978_v39 = vrot.slane %v977_v30, 1 }
 0x1d9   : > { %v888_v56 = vpop.f32.mrf.mxu1 }
 0x1da   : > { %v989_v59 = vmax.f32 %v927_v51, %v928_v53  ;;  %v889_v2 = vadd.f32 %v1572_v25, %v888_v56  ;;  %v984_v6 = vmax.f32 %v982_v44, %v983_v57  ;;  %v933_v27 = vmax.f32 %v897_v8, 0.0 }
 0x1db   : > { %v1327_v63 = vpop.f32.mrf.mxu1  ;;  %v979_v47 = vmax.f32 %v977_v30, %v978_v39 }
 0x1dc   : > { %v990_v1 = vmax.f32 %v989_v59, %v929_v58  ;;  %v931_v14 = vmax.f32 %v889_v2, 0.0  ;;  %v900_v15 = vadd.f32 %v1327_v63, %v1572_v25  ;;  %v985_v20 = vrot.slane %v984_v6, 2 }
 0x1dd   : > { %v891_v5 = vpop.f32.mrf.mxu1 }
 0x1de   : > { %v991_v7 = vmax.f32 %v990_v1, %v930_v0  ;;  %v892_v9 = vadd.f32 %v1572_v25, %v891_v5  ;;  %v934_v28 = vmax.f32 %v900_v15, 0.0  ;;  %v986_v32 = vmax.f32 %v984_v6, %v985_v20 }
 0x1df   : > { %v942_v25 = vrot.slane %v941_v18, 1 }
 0x1e0   : > { %v992_v13 = vrot.slane %v991_v7, 4  ;;  %v932_v16 = vmax.f32 %v892_v9, 0.0  ;;  %v987_v40 = vrot.slane %v986_v32, 1 }
 0x1e1   : > { %v943_v44 = vmax.f32 %v941_v18, %v942_v25 }
 0x1e2   : > { %v993_v21 = vmax.f32 %v991_v7, %v992_v13  ;;  %v998_v22 = vmax.f32 %v931_v14, %v932_v16  ;;  %v988_v49 = vmax.f32 %v986_v32, %v987_v40 }
 0x1e3   : > { %v1020_v48 = vsel %vm1019_vm1, %v952_v35, %v943_v44 }
 0x1e4   : > { %v994_v26 = vrot.slane %v993_v21, 2  ;;  %v999_v29 = vmax.f32 %v998_v22, %v933_v27  ;;  %v1022_v51 = vsel %vm1021_vm2, %v961_v42, %v1020_v48 }
 0x1e5   : > { %v1024_v53 = vsel %vm1023_vm3, %v970_v45, %v1022_v51 }
 0x1e6   : > { %v1000_v33 = vmax.f32 %v999_v29, %v934_v28  ;;  %v995_v36 = vmax.f32 %v993_v21, %v994_v26  ;;  %v1026_v55 = vsel %vm1025_vm4, %v979_v47, %v1024_v53 }
 0x1e7   : > { %v1028_v56 = vsel %vm1027_vm5, %v988_v49, %v1026_v55 }
 0x1e8   : > { %v1001_v38 = vrot.slane %v1000_v33, 4  ;;  %v996_v43 = vrot.slane %v995_v36, 1 }
 0x1ea   : > { %v1002_v41 = vmax.f32 %v1000_v33, %v1001_v38  ;;  %v997_v52 = vmax.f32 %v995_v36, %v996_v43 }
 0x1ec   : > { %v1003_v46 = vrot.slane %v1002_v41, 2  ;;  %v1030_v58 = vsel %vm1029_vm6, %v997_v52, %v1028_v56 }
 0x1ee   : > { %v1004_v50 = vmax.f32 %v1002_v41, %v1003_v46 }
 0x1f0   : > { %v1005_v54 = vrot.slane %v1004_v50, 1 }
 0x1f2   : > { %v1006_v57 = vmax.f32 %v1004_v50, %v1005_v54 }
 0x1f4   : > { %v1032_v59 = vsel %vm1031_vm7, %v1006_v57, %v1030_v58 }
 0x1f5   : > { %1034 = vst [vmem:[%s284_s30] sm:$0xff] %v1032_v59 }
 0x1f6 PF: > { %s15_s20 = sadd.s32 1, %s1415_s20   ;;  %s1625_s18 = smov %s1411_s19 }
 0x1f7   : > { %p12_p5 = scmp.ge.s32.totalorder %s15_s20, 4   ;;  %s1626_s19 = smov %s1628_s21 }
 0x1f9   :  { %14 = sbr.rel (!%p12_p5) target bundleno = 2 (0x2), region = 78 }

</bundles_post_ra>
